<compile_context>
chip_gen: v7x
topology: tpu7x:2x2x1
jax: 0.10.0
libtpu: 0.0.40
codegen_flags: <defaults>
</compile_context>

<pallas_src>
import jax
import jax.numpy as jnp
from jax.experimental import pallas as pl
from jax.experimental.pallas import tpu as pltpu


def _round_up(x: int, m: int) -> int:
    return ((x + m - 1) // m) * m


def _graphconv_kernel(h_ref, x_ref, w_ref, b_ref, out_ref):
    # h_ref : (TM, Nk)      bf16   -- one row-tile of H_hat
    # x_ref : (Nk, in_p)    bf16   -- full (padded) node features, resident
    # w_ref : (in_p, out_p) bf16   -- weight, resident
    # b_ref : (1, out_p)    f32    -- bias, resident
    # out_ref:(TM, out_p)   f32
    #
    # Big contraction on the MXU: bf16 x bf16 -> f32 accumulate.
    hx = jnp.dot(h_ref[...], x_ref[...], preferred_element_type=jnp.float32)
    # Tiny projection with W; keep the accumulated HX in f32.
    hxw = jnp.dot(hx, w_ref[...].astype(jnp.float32),
                  preferred_element_type=jnp.float32)
    out_ref[...] = (hxw + b_ref[...]).astype(out_ref.dtype)


def graph_conv(X, H_hat, W, b=None, *, tile_m=128):
    """out = H_hat @ (X @ W) + b  (bias optional), fused Pallas TPU kernel."""
    N, in_f = X.shape
    out_f = W.shape[1]

    # Lane-dense padding of the feature dims and the contraction dim.
    in_p = _round_up(in_f, 128)
    out_p = _round_up(out_f, 128)
    nk = _round_up(N, 128)                    # columns of H_hat / rows of X
    tm = min(_round_up(tile_m, 8), _round_up(N, 8))
    n_rows = _round_up(N, tm)                 # rows of H_hat / output

    Hb = jnp.pad(H_hat.astype(jnp.bfloat16), ((0, n_rows - N), (0, nk - N)))
    Xb = jnp.pad(X.astype(jnp.bfloat16), ((0, nk - N), (0, in_p - in_f)))
    Wb = jnp.pad(W.astype(jnp.bfloat16), ((0, in_p - in_f), (0, out_p - out_f)))
    if b is None:
        bb = jnp.zeros((1, out_p), jnp.float32)
    else:
        bb = jnp.pad(b.reshape(1, out_f).astype(jnp.float32),
                     ((0, 0), (0, out_p - out_f)))

    out_padded = pl.pallas_call(
        _graphconv_kernel,
        out_shape=jax.ShapeDtypeStruct((n_rows, out_p), jnp.float32),
        grid=(n_rows // tm,),
        in_specs=[
            pl.BlockSpec((tm, nk), lambda i: (i, 0)),        # H_hat row tile
            pl.BlockSpec((nk, in_p), lambda i: (0, 0)),      # X (resident)
            pl.BlockSpec((in_p, out_p), lambda i: (0, 0)),   # W (resident)
            pl.BlockSpec((1, out_p), lambda i: (0, 0)),      # b (resident)
        ],
        out_specs=pl.BlockSpec((tm, out_p), lambda i: (i, 0)),
        compiler_params=pltpu.CompilerParams(
            dimension_semantics=("parallel",),               # split across TCs
        ),
    )(Hb, Xb, Wb, bb)

    return out_padded[:N, :out_f]


def init_graphconv_params(key, in_f, out_f, bias=True):
    """Deterministic xavier_uniform_ for W, zeros for b (as in the module)."""
    bound = (6.0 / (in_f + out_f)) ** 0.5
    W = jax.random.uniform(key, (in_f, out_f), dtype=jnp.float32,
                           minval=-bound, maxval=bound)
    b = jnp.zeros((out_f,), dtype=jnp.float32) if bias else None
    return W, b


if __name__ == "__main__":
    # Small module-consistent shapes; N=256 with tm=128 exercises a 2-step grid.
    N, in_f, out_f = 256, 32, 64

    key = jax.random.PRNGKey(0)
    k_w, k_x, k_a = jax.random.split(key, 3)

    W, b = init_graphconv_params(k_w, in_f, out_f, bias=True)

    # Node features.
    X = jax.random.normal(k_x, (N, in_f), dtype=jnp.float32)

    # Symmetric-normalized adjacency with self loops: D^-1/2 (A + I) D^-1/2.
    A = (jax.random.uniform(k_a, (N, N)) < 0.05).astype(jnp.float32)
    A = jnp.maximum(A, A.T) + jnp.eye(N, dtype=jnp.float32)
    deg = A.sum(axis=1)
    d_inv_sqrt = 1.0 / jnp.sqrt(deg)
    H_hat = d_inv_sqrt[:, None] * A * d_inv_sqrt[None, :]

    out = graph_conv(X, H_hat, W, b)
    out = jax.block_until_ready(out)
    assert out.shape == (N, out_f)

    # Check 1: against a high-precision reference on the SAME bf16-quantized
    # inputs (isolates kernel correctness from the intentional bf16 cast).
    hp = jax.lax.Precision.HIGHEST
    Hq = H_hat.astype(jnp.bfloat16).astype(jnp.float32)
    Xq = X.astype(jnp.bfloat16).astype(jnp.float32)
    Wq = W.astype(jnp.bfloat16).astype(jnp.float32)
    ref_q = jnp.dot(Hq, jnp.dot(Xq, Wq, precision=hp), precision=hp) + b
    assert jnp.allclose(out, ref_q, atol=1e-2, rtol=1e-2)

    # Check 2: against the exact f32 module math (error = bf16 input quantization).
    ref_f32 = H_hat @ (X @ W) + b
    assert jnp.allclose(out, ref_f32, atol=3e-2, rtol=3e-2)

    print("KERNEL_OK")
</pallas_src>

<mosaic_0001>
module attributes {stable_mosaic.version = 11 : i64} {
  func.func @_graphconv_kernel(%arg0: i32, %arg1: memref<128x256xbf16, #tpu.memory_space<vmem>>, %arg2: memref<256x128xbf16, #tpu.memory_space<vmem>>, %arg3: memref<128x128xbf16, #tpu.memory_space<vmem>>, %arg4: memref<1x128xf32, #tpu.memory_space<vmem>>, %arg5: memref<128x128xf32, #tpu.memory_space<vmem>>) attributes {dimension_semantics = [#tpu.dimension_semantics<parallel>], iteration_bounds = array<i64: 2>, scalar_prefetch = 0 : i64, scratch_operands = 0 : i64, tpu.core_type = #tpu.core_type<tc>, window_params = [{transform_indices = @transform_0, window_bounds = array<i64: 128, 256>}, {pipeline_mode = #tpu.pipeline_mode<synchronous>, transform_indices = @transform_1, window_bounds = array<i64: 256, 128>}, {pipeline_mode = #tpu.pipeline_mode<synchronous>, transform_indices = @transform_2, window_bounds = array<i64: 128, 128>}, {pipeline_mode = #tpu.pipeline_mode<synchronous>, transform_indices = @transform_3, window_bounds = array<i64: 1, 128>}, {transform_indices = @transform_4, window_bounds = array<i64: 128, 128>}]} {
    %c0 = arith.constant 0 : index
    %c0_0 = arith.constant 0 : index
    %0 = vector.load %arg1[%c0, %c0_0] : memref<128x256xbf16, #tpu.memory_space<vmem>>, vector<128x256xbf16>
    %c0_1 = arith.constant 0 : index
    %c0_2 = arith.constant 0 : index
    %1 = vector.load %arg2[%c0_1, %c0_2] : memref<256x128xbf16, #tpu.memory_space<vmem>>, vector<256x128xbf16>
    %cst = arith.constant dense<0.000000e+00> : vector<128x128xf32>
    %2 = tpu.matmul %0, %1, %cst {dimension_numbers = #tpu.dot_dimension_numbers<[1], [0], [0], [1], [0, 0, 1, 1], [], []>} : vector<128x256xbf16>, vector<256x128xbf16>, vector<128x128xf32> -> vector<128x128xf32>
    %c0_3 = arith.constant 0 : index
    %c0_4 = arith.constant 0 : index
    %3 = vector.load %arg3[%c0_3, %c0_4] : memref<128x128xbf16, #tpu.memory_space<vmem>>, vector<128x128xbf16>
    %4 = arith.extf %3 : vector<128x128xbf16> to vector<128x128xf32>
    %cst_5 = arith.constant dense<0.000000e+00> : vector<128x128xf32>
    %5 = tpu.matmul %2, %4, %cst_5 {dimension_numbers = #tpu.dot_dimension_numbers<[1], [0], [0], [1], [0, 0, 1, 1], [], []>} : vector<128x128xf32>, vector<128x128xf32>, vector<128x128xf32> -> vector<128x128xf32>
    %c0_6 = arith.constant 0 : index
    %c0_7 = arith.constant 0 : index
    %6 = vector.load %arg4[%c0_6, %c0_7] : memref<1x128xf32, #tpu.memory_space<vmem>>, vector<1x128xf32>
    %7 = vector.broadcast %6 : vector<1x128xf32> to vector<128x128xf32>
    %8 = arith.addf %5, %7 : vector<128x128xf32>
    %c0_8 = arith.constant 0 : index
    %c0_9 = arith.constant 0 : index
    %9 = vector.load %arg5[%c0_8, %c0_9] : memref<128x128xf32, #tpu.memory_space<vmem>>, vector<128x128xf32>
    tpu.vector_store %arg5[%c0_8, %c0_9], %8 {strides = array<i32>} : memref<128x128xf32, #tpu.memory_space<vmem>>, vector<128x128xf32>,
    return
  }
  func.func @transform_0(%arg0: i32) -> (i32, i32) {
    %c0_i32 = arith.constant 0 : i32
    %c0_i32_0 = arith.constant 0 : i32
    return %arg0, %c0_i32 : i32, i32
  }
  func.func @transform_1(%arg0: i32) -> (i32, i32) {
    %c0_i32 = arith.constant 0 : i32
    %c0_i32_0 = arith.constant 0 : i32
    %c0_i32_1 = arith.constant 0 : i32
    return %c0_i32, %c0_i32_0 : i32, i32
  }
  func.func @transform_2(%arg0: i32) -> (i32, i32) {
    %c0_i32 = arith.constant 0 : i32
    %c0_i32_0 = arith.constant 0 : i32
    %c0_i32_1 = arith.constant 0 : i32
    return %c0_i32, %c0_i32_0 : i32, i32
  }
  func.func @transform_3(%arg0: i32) -> (i32, i32) {
    %c0_i32 = arith.constant 0 : i32
    %c0_i32_0 = arith.constant 0 : i32
    %c0_i32_1 = arith.constant 0 : i32
    return %c0_i32, %c0_i32_0 : i32, i32
  }
  func.func @transform_4(%arg0: i32) -> (i32, i32) {
    %c0_i32 = arith.constant 0 : i32
    %c0_i32_0 = arith.constant 0 : i32
    return %arg0, %c0_i32 : i32, i32
  }
}

</mosaic_0001>

<bundles_post_ra>
// kernel: tpu_custom_call.1
= control target key start
LH: loop header
LB: loop body
LE: loop exit
PB: predicated region body
PF: predicated region fallthrough
CT: control target
= control target key end

     0   :  { %9 = vsyncpa [#allocation3], 0  ;;  %s1738_s0 = inlined_call_operand.hbm [shape: bf16[256,256], index: 0, kind: input, shape index: {}]   ;;  %s1739_s1 = inlined_call_operand.hbm [shape: bf16[256,128], index: 1, kind: input, shape index: {}]   ;;  %s1740_s2 = inlined_call_operand.hbm [shape: bf16[128,128], index: 2, kind: input, shape index: {}]   ;;  %s1741_s3 = inlined_call_operand.vmem [shape: f32[1,128], index: 3, kind: input, shape index: {}]   ;;  %s1742_s4 = inlined_call_operand.hbm [shape: f32[256,128], index: 4, kind: output, shape index: {}]  }
   0x1   :  { %11 = vsyncpa [#allocation3 + $0x1], 0 }
   0x2   :  { %12 = vsyncpa [#allocation6], 0 }
   0x3   :  { %13 = vsyncpa [#allocation4], 0 }
   0x4   :  { %15 = vsyncpa [#allocation4 + $0x1], 0  ;;  %s1460_s15 = smov 0   ;;  %s1462_s16 = smov 0  }
   0x5   :  { %s1464_s17 = smov 0   ;;  %s1466_s18 = smov 0  }
   0x6 LB: > { %s1481_s19 = sadd.s32 4294967295, %s1423_s18   ;;  %s876_s20 = sadd.s32 4294967294, %s1423_s18   ;;  %s1423_s18 = sphi %s1466_s18, %s1762_s18   ;;  %s1419_s17 = sphi %s1464_s17, %s1761_s17   ;;  %s1415_s16 = sphi %s1462_s16, %s1760_s16   ;;  %s1411_s15 = sphi %s1460_s15, %s1759_s15  }
   0x7   : > { %p41_p0 = scmp.ne.s32.totalorder %s1415_s16, %s1411_s15  ;;  %p1743_p1 = scmp.eq.s32.totalorder %s1481_s19, 0 }
   0x8   : > { %p134_p3 = scmp.eq.s32.totalorder %s876_s20, 1  ;;  %p877_p5 = scmp.ge.s32.totalorder %s1423_s18, 1 }
   0x9   : > { %p1490_p4 = por %p1743_p1, %p41_p0  ;;  %p141_p7 = scmp.lt.s32.totalorder %s1423_s18, 3 }
   0xa   : > { %p1495_p6 = por %p134_p3, %p41_p0  ;;  %s1425_s24 = smov [#allocation5]  }
   0xb   : > { %s1746_s21 = scalar_select %p1490_p4, 1, 0 }
   0xc   : > { %s1747_s22 = scalar_select %p1495_p6, 1, 0 }
   0xd   : > { %p1500_p8 = pnand %p877_p5, %p141_p7  ;;  %s153_s25 = sshll.u32 %s1425_s24, 4  ;;  %s1504_s25 = int_to_ptr.vmem [resolvable:$true] %s153_s25 }
   0xe   : > { %s1426_s27 = smov [#allocation7]   ;;  %s1267_s5 = scalar_lea.hbm %s1739_s1, 2048 }
   0xf   : > { %p1166_p9 = pneg %p1500_p8  ;;  %s166_s28 = sshll.u32 %s1426_s27, 4  ;;  %s1515_s28 = int_to_ptr.vmem [resolvable:$true] %s166_s28 }
  0x10   : > { %p1268_p12 = scmp.ne.s32.totalorder %s1739_s1, %s1267_s5  ;;  %p1274_p5 = scmp.lt.u32.totalorder %s1267_s5, %s1739_s1 }
  0x11   : > { %p1511_p11 = pnand %p1166_p9, %p1743_p1 }
  0x13   : > { %p1269_p13 = pneg %p1511_p11 }
  0x15   : > { %p1270_p0 = pnand %p1269_p13, %p1268_p12 }
  0x17   : > { %p1271_p3 = pneg %p1270_p0 }
  0x19   : > { %p1276_p7 = pnand %p1274_p5, %p1271_p3 }
  0x1b   : > { %1279 = shalt.err (!%p1276_p7)
}
  0x1c   : > { %s1280_s10 = scalar_lea.vmem %s1504_s25, 2048  ;;  %p1288_p2 = scmp.lt.s32.totalorder %s1504_s25, %s1504_s25 }
  0x1d   : > { %p1281_p9 = scmp.ne.s32.totalorder %s1504_s25, %s1280_s10  ;;  %p1289_p12 = scmp.lt.s32.totalorder %s1280_s10, %s1280_s10 }
  0x1f   : > { %p1283_p10 = pnand %p1281_p9, %p1269_p13  ;;  %p1290_p0 = por %p1289_p12, %p1288_p2 }
  0x21   : > { %p1284_p1 = pneg %p1283_p10 }
  0x23   : > { %p1291_p6 = pnand %p1290_p0, %p1284_p1 }
  0x25   : > { %1294 = shalt.err (!%p1291_p6)
}
  0x26   : > { %s1427_s11 = smov 64   ;;  %s1428_s12 = smov 4  }
  0x27   : > { %1169 = dma.hbm_to_vmem [thread:$0]  (!%p1511_p11), %s1739_s1, 2048, %s1504_s25, [#allocation6], %s1427_s11, %s1427_s11, %s1428_s12  }
  0x28   : > { %s1295_s27 = scalar_lea.hbm %s1740_s2, 1024 }
  0x29   : > { %p1296_p2 = scmp.ne.s32.totalorder %s1740_s2, %s1295_s27  ;;  %p1302_p10 = scmp.lt.u32.totalorder %s1295_s27, %s1740_s2 }
  0x2b   : > { %p1298_p1 = pnand %p1296_p2, %p1269_p13 }
  0x2d   : > { %p1299_p6 = pneg %p1298_p1 }
  0x2f   : > { %p1304_p3 = pnand %p1302_p10, %p1299_p6 }
  0x31   : > { %1307 = shalt.err (!%p1304_p3)
}
  0x32   : > { %s1308_s25 = scalar_lea.vmem %s1515_s28, 1024  ;;  %p1316_p12 = scmp.lt.s32.totalorder %s1515_s28, %s1515_s28 }
  0x33   : > { %p1309_p5 = scmp.ne.s32.totalorder %s1515_s28, %s1308_s25  ;;  %p1317_p0 = scmp.lt.s32.totalorder %s1308_s25, %s1308_s25 }
  0x35   : > { %p1311_p7 = pnand %p1309_p5, %p1269_p13  ;;  %p1318_p2 = por %p1317_p0, %p1316_p12 }
  0x37   : > { %p1312_p9 = pneg %p1311_p7 }
  0x39   : > { %p1319_p1 = pnand %p1318_p2, %p1312_p9 }
  0x3b   : > { %1322 = shalt.err (!%p1319_p1)
}
  0x3c   : > { %1172 = dma.hbm_to_vmem [thread:$0]  (!%p1511_p11), %s1740_s2, 1024, %s1515_s28, [#allocation6], %s1427_s11, %s1427_s11, %s1428_s12  }
  0x3d   : > { %s1570_s9 = sadd.s32 1, %s1423_s18   ;;  %s28_s26 = sadd.s32 1, %s1419_s17 }
  0x3e   : > { %s25_s10 = ssub.s32 %s1423_s18, %s1570_s9  ;;  %p35_p13 = scmp.ne.s32.totalorder %s1419_s17, %s1415_s16 }
  0x3f   : > { %p26_p6 = scmp.eq.s32.totalorder %s25_s10, 0  ;;  %p36_p10 = scmp.eq.s32.totalorder %s1423_s18, 0 }
  0x40   : > { %p1750_p3 = scmp.eq.s32.totalorder %s1481_s19, 1  ;;  %p1183_p7 = scmp.lt.s32.totalorder %s1423_s18, 2 }
  0x41   : > { %s1586_s14 = scalar_select %p26_p6, %s1419_s17, %s28_s26  }
  0x42   : > { %p1580_p5 = por %p1750_p3, %p35_p13  ;;  %p37_p9 = por %p36_p10, %p35_p13 }
  0x43   : > { %s183_s20 = sand.u32 1, %s1419_s17   ;;  %s929_s28 = sshll.u32 %s1423_s18, 11 }
  0x44   : > { %s1751_s13 = scalar_select %p1580_p5, 1, 0 }
  0x45   : > { %s881_s24 = sshll.u32 %s183_s20, 7  ;;  %s1593_s27 = scalar_lea.hbm %s1738_s0, %s929_s28 }
  0x46   : > { %s187_s29 = scalar_lea.vmem [#allocation2], %s881_s24  ;;  %p1597_p11 = pnand %p1183_p7, %p37_p9 }
  0x47   : > { %s195_s30 = sshll.u32 %s187_s29, 4  ;;  %s1601_s6 = scalar_lea.sflag [#allocation3], %s183_s20  ;;  %s1595_s30 = int_to_ptr.vmem [resolvable:$true] %s195_s30 }
  0x48   : > { %s1323_s25 = scalar_lea.hbm %s1593_s27, 2048  ;;  %p1325_p0 = pneg %p1597_p11 }
  0x49   : > { %p1324_p12 = scmp.ne.s32.totalorder %s1593_s27, %s1323_s25  ;;  %s1328_s26 = scalar_lea.hbm %s1738_s0, 4096 }
  0x4a   : > { %p1329_p13 = scmp.lt.u32.totalorder %s1593_s27, %s1738_s0  ;;  %p1330_p6 = scmp.lt.u32.totalorder %s1328_s26, %s1323_s25 }
  0x4b   : > { %p1326_p2 = pnand %p1325_p0, %p1324_p12  ;;  %p1332_p3 = scmp.lt.u32.totalorder %s1323_s25, %s1593_s27 }
  0x4c   : > { %p1331_p10 = por %p1330_p6, %p1329_p13 }
  0x4d   : > { %p1327_p1 = pneg %p1326_p2 }
  0x4e   : > { %p1333_p7 = por %p1332_p3, %p1331_p10 }
  0x50   : > { %p1334_p9 = pnand %p1333_p7, %p1327_p1 }
  0x52   : > { %1337 = shalt.err (!%p1334_p9)
}
  0x53   : > { %s1338_s20 = scalar_lea.vmem %s1595_s30, 2048  ;;  %s1429_s28 = smov [#allocation2]  }
  0x54   : > { %p1339_p12 = scmp.ne.s32.totalorder %s1595_s30, %s1338_s20  ;;  %s1343_s11 = sshll.u32 %s1429_s28, 4  ;;  %s1344_s11 = int_to_ptr.vmem [resolvable:$false] %s1343_s11 }
  0x55   : > { %s1345_s12 = scalar_lea.vmem %s1344_s11, 4096  ;;  %p1346_p4 = scmp.lt.s32.totalorder %s1595_s30, %s1344_s11 }
  0x56   : > { %p1341_p2 = pnand %p1339_p12, %p1325_p0  ;;  %p1347_p13 = scmp.lt.s32.totalorder %s1345_s12, %s1338_s20 }
  0x58   : > { %p1342_p5 = pneg %p1341_p2  ;;  %p1348_p6 = por %p1347_p13, %p1346_p4 }
  0x5a   : > { %p1349_p10 = pnand %p1348_p6, %p1342_p5 }
  0x5c   : > { %1352 = shalt.err (!%p1349_p10)
}
  0x5d   : > { %s1430_s29 = smov 128   ;;  %s1431_s25 = smov 8  }
  0x5e   : > { %1176 = dma.hbm_to_vmem [thread:$0]  (!%p1597_p11), %s1593_s27, 2048, %s1595_s30, %s1601_s6, %s1430_s29, %s1430_s29, %s1431_s25  }
  0x5f   : > { %207 = sbr.rel (%p1500_p8) target bundleno = 642 (0x282), region = 36  ;;  %s1632_s7 = sand.u32 (!%p1500_p8), 1, %s1415_s16  }
  0x60   : > { %s886_s8 = sshll.u32 (!%p1500_p8), %s1632_s7, 7  ;;  %s210_s26 = scalar_lea.sflag (!%p1500_p8), [#allocation3], %s1632_s7 }
  0x61   : > { %s1638_s10 = scalar_lea.vmem (!%p1500_p8), [#allocation2], %s886_s8  ;;  %p1753_p4 = scmp.ne.s32.totalorder (!%p1500_p8), %s1746_s21, 0 }
  0x66   : > { %1398 = dma.done.wait (%p1753_p4), %s210_s26, 2048  }
  0x67   : > { %1400 = vsyncadd (%p1753_p4), %s210_s26, 4294965248  ;;  %p1754_p5 = scmp.eq.s32.totalorder %s1481_s19, 0 }
  0x69   : > { %1402 = dma.done.wait (%p1754_p5), [#allocation6], 3072   ;;  %p1755_p8 = pmov %p1754_p5 }
  0x6a   : > { %v1227_v0 = vld [vmem:[#allocation5 + $0x40] sm:$0xff]   ;;  %v1229_v2 = vld [vmem:[#allocation5 + $0x48] sm:$0xff]   ;;  %v1231_v4 = vld [vmem:[#allocation5 + $0x50] sm:$0xff]   ;;  %s1669_s27 = scalar_lea.vmem [#allocation8], %s886_s8  ;;  %s930_s30 = sshll.u32 %s1481_s19, 11 }
  0x6b   : > { %1404 = vsyncadd (%p1755_p8), [#allocation6], 4294964224  ;;  %v1228_v1 = vld [vmem:[#allocation5] sm:$0xff]   ;;  %970 = vmatprep.subr.bf16.mxu0 %v1227_v0  ;;  %v1230_v3 = vld [vmem:[#allocation5 + $0x8] sm:$0xff]   ;;  %s784_s5 = sshll.u32 %s1669_s27, 4  ;;  %s1690_s20 = scalar_lea.hbm %s1742_s4, %s930_s30  ;;  %s1692_s5 = int_to_ptr.vmem [resolvable:$true] %s784_s5 }
  0x6c   : > { %971 = vmatpush3.bf16.msra.mxu0 %v1228_v1  ;;  %v1232_v5 = vld [vmem:[#allocation5 + $0x10] sm:$0xff]   ;;  %v1233_v6 = vld [vmem:[#allocation5 + $0x58] sm:$0xff]   ;;  %v1235_v8 = vld [vmem:[#allocation5 + $0x60] sm:$0xff]   ;;  %s771_s28 = scalar_lea.sflag [#allocation4], %s1632_s7  ;;  %s1353_s11 = scalar_lea.vmem %s1692_s5, 2048 }
  0x6d   : > { %972 = vmatprep.subr.bf16.mxu0 %v1229_v2  ;;  %v1234_v7 = vld [vmem:[#allocation5 + $0x18] sm:$0xff]   ;;  %v1236_v9 = vld [vmem:[#allocation5 + $0x20] sm:$0xff]   ;;  %v1237_v10 = vld [vmem:[#allocation5 + $0x68] sm:$0xff]   ;;  %p1354_p11 = scmp.ne.s32.totalorder %s1692_s5, %s1353_s11  ;;  %p1756_p0 = scmp.ne.s32.totalorder %s1751_s13, 0 }
  0x6e   : > { %v1245_v11 = vld [vmem:[%s1638_s10 + $0x4] ss:$8 sps:$4 sm:$0xff]   ;;  %v1239_v13 = vld [vmem:[#allocation5 + $0x70] sm:$0xff]   ;;  %v1241_v15 = vld [vmem:[#allocation5 + $0x78] sm:$0xff]   ;;  %s1432_s19 = smov [#allocation8]  }
  0x6f   : > { %v1238_v12 = vld [vmem:[#allocation5 + $0x28] sm:$0xff]   ;;  %505 = vmatprep.mubr.bf16.mxu0 %v1245_v11  ;;  %v1240_v14 = vld [vmem:[#allocation5 + $0x30] sm:$0xff]   ;;  %v932_v16 = vld [vmem:[#allocation7] sm:$0xff]   ;;  %p1355_p1 = pnand %p1354_p11, %p1756_p0  ;;  %s1357_s12 = sshll.u32 %s1432_s19, 4  ;;  %s1358_s12 = int_to_ptr.vmem [resolvable:$false] %s1357_s12 }
  0x70   : > { %973 = vmatpush3.bf16.msra.mxu0 %v1230_v3  ;;  %v1242_v17 = vld [vmem:[#allocation5 + $0x38] sm:$0xff]   ;;  %1123 = vmatprep.subr.bf16.mxu1 %v932_v16  ;;  %v963_v18 = vld [vmem:[#allocation7 + $0x8] sm:$0xff]   ;;  %v964_v20 = vld [vmem:[#allocation7 + $0x10] sm:$0xff]   ;;  %s1359_s29 = scalar_lea.vmem %s1358_s12, 4096  ;;  %p1360_p7 = scmp.lt.s32.totalorder %s1692_s5, %s1358_s12 }
  0x71   : > { %974 = vmatprep.subr.bf16.mxu0 %v1231_v4  ;;  %1125 = vmatpush3.bf16.msra.mxu1 %v932_v16  ;;  %v1243_v19 = vld [vmem:[%s1638_s10] ss:$8 sps:$4 sm:$0xff]   ;;  %v1246_v21 = vld [vmem:[%s1638_s10 + $0x14] ss:$8 sps:$4 sm:$0xff]   ;;  %v1248_v23 = vld [vmem:[%s1638_s10 + $0x10] ss:$8 sps:$4 sm:$0xff]   ;;  %p1356_p3 = pneg %p1355_p1  ;;  %p1361_p9 = scmp.lt.s32.totalorder %s1359_s29, %s1353_s11 }
  0x72   : > { %1127 = vmatprep.subr.bf16.mxu1 %v963_v18  ;;  %v965_v22 = vld [vmem:[#allocation7 + $0x18] sm:$0xff]   ;;  %v966_v24 = vld [vmem:[#allocation7 + $0x20] sm:$0xff]   ;;  %v967_v26 = vld [vmem:[#allocation7 + $0x28] sm:$0xff]  }
  0x73   : > { %v1249_v25 = vld [vmem:[%s1638_s10 + $0x24] ss:$8 sps:$4 sm:$0xff]   ;;  %v1251_v27 = vld [vmem:[%s1638_s10 + $0x20] ss:$8 sps:$4 sm:$0xff]   ;;  %v968_v28 = vld [vmem:[#allocation7 + $0x30] sm:$0xff]   ;;  %p1362_p12 = por %p1361_p9, %p1360_p7 }
  0x74   : > { %975 = vmatpush3.bf16.msra.mxu0 %v1232_v5  ;;  %v1252_v29 = vld [vmem:[%s1638_s10 + $0x34] ss:$8 sps:$4 sm:$0xff]   ;;  %v1254_v30 = vld [vmem:[%s1638_s10 + $0x30] ss:$8 sps:$4 sm:$0xff]   ;;  %v1255_v31 = vld [vmem:[%s1638_s10 + $0x44] ss:$8 sps:$4 sm:$0xff]  }
  0x75   : > { %976 = vmatprep.subr.bf16.mxu0 %v1233_v6  ;;  %1129 = vmatpush3.bf16.msra.mxu1 %v963_v18  ;;  %v1257_v32 = vld [vmem:[%s1638_s10 + $0x40] ss:$8 sps:$4 sm:$0xff]   ;;  %v1258_v33 = vld [vmem:[%s1638_s10 + $0x54] ss:$8 sps:$4 sm:$0xff]   ;;  %v1260_v34 = vld [vmem:[%s1638_s10 + $0x50] ss:$8 sps:$4 sm:$0xff]   ;;  %p1363_p2 = pnand %p1362_p12, %p1356_p3 }
  0x76   : > { %1131 = vmatprep.subr.bf16.mxu1 %v964_v20  ;;  %v1261_v35 = vld [vmem:[%s1638_s10 + $0x64] ss:$8 sps:$4 sm:$0xff]   ;;  %v1263_v36 = vld [vmem:[%s1638_s10 + $0x60] ss:$8 sps:$4 sm:$0xff]   ;;  %v1264_v37 = vld [vmem:[%s1638_s10 + $0x74] ss:$8 sps:$4 sm:$0xff]  }
  0x77   : > { %v1266_v38 = vld [vmem:[%s1638_s10 + $0x70] ss:$8 sps:$4 sm:$0xff]  }
  0x78   : > { %977 = vmatpush3.bf16.msra.mxu0 %v1234_v7  ;;  %v969_v39 = vld [vmem:[#allocation7 + $0x38] sm:$0xff]  }
  0x79   : > { %978 = vmatprep.subr.bf16.mxu0 %v1235_v8  ;;  %1133 = vmatpush3.bf16.msra.mxu1 %v964_v20 }
  0x7a   : > { %1135 = vmatprep.subr.bf16.mxu1 %v965_v22 }
  0x7c   : > { %979 = vmatpush3.bf16.msra.mxu0 %v1236_v9 }
  0x7d   : > { %980 = vmatprep.subr.bf16.mxu0 %v1237_v10  ;;  %1137 = vmatpush3.bf16.msra.mxu1 %v965_v22 }
  0x7e   : > { %1139 = vmatprep.subr.bf16.mxu1 %v966_v24 }
  0x80   : > { %981 = vmatpush3.bf16.msra.mxu0 %v1238_v12 }
  0x81   : > { %982 = vmatprep.subr.bf16.mxu0 %v1239_v13  ;;  %1141 = vmatpush3.bf16.msra.mxu1 %v966_v24  ;;  %v922_v24 = vld [vmem:[%s1741_s3] ss:$0 sm:$0xff] }
  0x82   : > { %1143 = vmatprep.subr.bf16.mxu1 %v967_v26 }
  0x84   : > { %983 = vmatpush3.bf16.msra.mxu0 %v1240_v14 }
  0x85   : > { %984 = vmatprep.subr.bf16.mxu0 %v1241_v15  ;;  %1145 = vmatpush3.bf16.msra.mxu1 %v967_v26 }
  0x86   : > { %1147 = vmatprep.subr.bf16.mxu1 %v968_v28 }
  0x88   : > { %985 = vmatpush3.bf16.msra.mxu0 %v1242_v17 }
  0x89   : > { %1149 = vmatpush3.bf16.msra.mxu1 %v968_v28 }
  0x8a   : > { %1151 = vmatprep.subr.bf16.mxu1 %v969_v39 }
  0x8b   : > { %506 = vmatmul.mubr.bf16.vlgmr.msra.gmra.mrb[0].mxu0 %v1243_v19 }
  0x8c   : > { %513 = vmatprep.mubr.bf16.mxu0 %v1246_v21 }
  0x8d   : > { %1153 = vmatpush3.bf16.msra.mxu1 %v969_v39 }
  0x93   : > { %514 = vmatmul.mubr.bf16.gmra.mrb[4].mxu0 %v1248_v23 }
  0x94   : > { %521 = vmatprep.mubr.bf16.mxu0 %v1249_v25 }
  0x9b   : > { %522 = vmatmul.mubr.bf16.gmra.mrb[8].mxu0 %v1251_v27 }
  0x9c   : > { %529 = vmatprep.mubr.bf16.mxu0 %v1252_v29 }
  0xa3   : > { %530 = vmatmul.mubr.bf16.gmra.mrb[12].mxu0 %v1254_v30 }
  0xa4   : > { %537 = vmatprep.mubr.bf16.mxu0 %v1255_v31 }
  0xab   : > { %538 = vmatmul.mubr.bf16.gmra.mrb[16].mxu0 %v1257_v32 }
  0xac   : > { %545 = vmatprep.mubr.bf16.mxu0 %v1258_v33 }
  0xb3   : > { %546 = vmatmul.mubr.bf16.gmra.mrb[20].mxu0 %v1260_v34 }
  0xb4   : > { %553 = vmatprep.mubr.bf16.mxu0 %v1261_v35 }
  0xbb   : > { %554 = vmatmul.mubr.bf16.gmra.mrb[24].mxu0 %v1263_v36 }
  0xbc   : > { %561 = vmatprep.mubr.bf16.mxu0 %v1264_v37 }
  0xc3   : > { %562 = vmatmul.mubr.bf16.gmra.mrb[28].mxu0 %v1266_v38 }
 0x15e   : > { %v986_v40 = vpop.f32.mrb[0].mxu0 }
 0x15f   : > { %v987_v41 = vpop.f32.mrb[1].mxu0 }
 0x160   : > { %v989_v42 = vpop.f32.mrb[2].mxu0  ;;  %v988_v43 = vadd.f32 %v987_v41, %v986_v40 }
 0x161   : > { %v990_v44 = vpop.f32.mrb[3].mxu0 }
 0x162   : > { %v991_v45 = vadd.f32 %v990_v44, %v989_v42  ;;  %1098 = vmatprep.mubr.f32.mxu1 %v988_v43 }
 0x164   : > { %1099 = vmatmul.mubr.f32.vlgmr.msra.gmra.mrb[0].mxu1 %v991_v45 }
 0x166   : > { %v992_v46 = vpop.f32.mrb[4].mxu0 }
 0x167   : > { %v993_v47 = vpop.f32.mrb[5].mxu0 }
 0x168   : > { %v994_v48 = vadd.f32 %v993_v47, %v992_v46  ;;  %v995_v49 = vpop.f32.mrb[6].mxu0 }
 0x169   : > { %v996_v50 = vpop.f32.mrb[7].mxu0 }
 0x16a   : > { %v997_v51 = vadd.f32 %v996_v50, %v995_v49  ;;  %1101 = vmatprep.mubr.f32.mxu1 %v994_v48 }
 0x16c   : > { %1102 = vmatmul.mubr.f32.gmra.mrb[2].mxu1 %v997_v51 }
 0x16e   : > { %v998_v52 = vpop.f32.mrb[8].mxu0 }
 0x16f   : > { %v999_v53 = vpop.f32.mrb[9].mxu0 }
 0x170   : > { %v1000_v54 = vadd.f32 %v999_v53, %v998_v52  ;;  %v1001_v55 = vpop.f32.mrb[10].mxu0 }
 0x171   : > { %v1002_v56 = vpop.f32.mrb[11].mxu0 }
 0x172   : > { %v1003_v57 = vadd.f32 %v1002_v56, %v1001_v55  ;;  %1104 = vmatprep.mubr.f32.mxu1 %v1000_v54 }
 0x174   : > { %1105 = vmatmul.mubr.f32.gmra.mrb[4].mxu1 %v1003_v57 }
 0x176   : > { %v1004_v58 = vpop.f32.mrb[12].mxu0 }
 0x177   : > { %v1005_v59 = vpop.f32.mrb[13].mxu0 }
 0x178   : > { %v1006_v60 = vadd.f32 %v1005_v59, %v1004_v58  ;;  %v1007_v61 = vpop.f32.mrb[14].mxu0 }
 0x179   : > { %v1008_v62 = vpop.f32.mrb[15].mxu0 }
 0x17a   : > { %v1009_v63 = vadd.f32 %v1008_v62, %v1007_v61  ;;  %1107 = vmatprep.mubr.f32.mxu1 %v1006_v60 }
 0x17c   : > { %1108 = vmatmul.mubr.f32.gmra.mrb[6].mxu1 %v1009_v63 }
 0x17e   : > { %v1010_v0 = vpop.f32.mrb[16].mxu0 }
 0x17f   : > { %v1011_v1 = vpop.f32.mrb[17].mxu0 }
 0x180   : > { %v1012_v2 = vadd.f32 %v1011_v1, %v1010_v0  ;;  %v1013_v3 = vpop.f32.mrb[18].mxu0 }
 0x181   : > { %v1014_v4 = vpop.f32.mrb[19].mxu0 }
 0x182   : > { %v1015_v5 = vadd.f32 %v1014_v4, %v1013_v3  ;;  %1110 = vmatprep.mubr.f32.mxu1 %v1012_v2 }
 0x184   : > { %1111 = vmatmul.mubr.f32.gmra.mrb[8].mxu1 %v1015_v5 }
 0x186   : > { %v1016_v6 = vpop.f32.mrb[20].mxu0 }
 0x187   : > { %v1017_v7 = vpop.f32.mrb[21].mxu0 }
 0x188   : > { %v1018_v8 = vadd.f32 %v1017_v7, %v1016_v6  ;;  %v1019_v9 = vpop.f32.mrb[22].mxu0 }
 0x189   : > { %v1020_v10 = vpop.f32.mrb[23].mxu0 }
 0x18a   : > { %v1021_v11 = vadd.f32 %v1020_v10, %v1019_v9  ;;  %1113 = vmatprep.mubr.f32.mxu1 %v1018_v8 }
 0x18c   : > { %1114 = vmatmul.mubr.f32.gmra.mrb[10].mxu1 %v1021_v11 }
 0x18e   : > { %v1022_v12 = vpop.f32.mrb[24].mxu0 }
 0x18f   : > { %v1023_v13 = vpop.f32.mrb[25].mxu0 }
 0x190   : > { %v1024_v14 = vadd.f32 %v1023_v13, %v1022_v12  ;;  %v1025_v15 = vpop.f32.mrb[26].mxu0 }
 0x191   : > { %v1026_v16 = vpop.f32.mrb[27].mxu0 }
 0x192   : > { %v1027_v17 = vadd.f32 %v1026_v16, %v1025_v15  ;;  %1116 = vmatprep.mubr.f32.mxu1 %v1024_v14 }
 0x194   : > { %1117 = vmatmul.mubr.f32.gmra.mrb[12].mxu1 %v1027_v17 }
 0x196   : > { %v1028_v18 = vpop.f32.mrb[28].mxu0 }
 0x197   : > { %v1029_v19 = vpop.f32.mrb[29].mxu0 }
 0x198   : > { %v1030_v20 = vadd.f32 %v1029_v19, %v1028_v18  ;;  %v1031_v21 = vpop.f32.mrb[30].mxu0 }
 0x199   : > { %v1032_v22 = vpop.f32.mrb[31].mxu0 }
 0x19a   : > { %v1033_v23 = vadd.f32 %v1032_v22, %v1031_v21  ;;  %1119 = vmatprep.mubr.f32.mxu1 %v1030_v20 }
 0x19c   : > { %1120 = vmatmul.mubr.f32.gmra.mrb[14].mxu1 %v1033_v23 }
 0x237   : > { %v1100_v25 = vpop.f32.mrb[0].mxu1 }
 0x238   : > { %v681_v26 = vadd.f32 %v1100_v25, %v922_v24  ;;  %v675_v27 = vpop.f32.mrb[1].mxu1 }
 0x239   : > { %v676_v28 = vadd.f32 %v922_v24, %v675_v27 }
 0x23a   : > { %755 = vst [vmem:[%s1669_s27 + $0x8] sm:$0xff] %v681_v26 }
 0x23b   : > { %754 = vst [vmem:[%s1669_s27] sm:$0xff] %v676_v28 }
 0x23f   : > { %v1103_v29 = vpop.f32.mrb[2].mxu1 }
 0x240   : > { %v691_v30 = vadd.f32 %v1103_v29, %v922_v24  ;;  %v685_v31 = vpop.f32.mrb[3].mxu1 }
 0x241   : > { %v686_v32 = vadd.f32 %v922_v24, %v685_v31 }
 0x242   : > { %757 = vst [vmem:[%s1669_s27 + $0x18] sm:$0xff] %v691_v30 }
 0x243   : > { %756 = vst [vmem:[%s1669_s27 + $0x10] sm:$0xff] %v686_v32 }
 0x247   : > { %v1106_v33 = vpop.f32.mrb[4].mxu1 }
 0x248   : > { %v701_v34 = vadd.f32 %v1106_v33, %v922_v24  ;;  %v695_v35 = vpop.f32.mrb[5].mxu1 }
 0x249   : > { %v696_v36 = vadd.f32 %v922_v24, %v695_v35 }
 0x24a   : > { %759 = vst [vmem:[%s1669_s27 + $0x28] sm:$0xff] %v701_v34 }
 0x24b   : > { %758 = vst [vmem:[%s1669_s27 + $0x20] sm:$0xff] %v696_v36 }
 0x24f   : > { %v1109_v37 = vpop.f32.mrb[6].mxu1 }
 0x250   : > { %v711_v38 = vadd.f32 %v1109_v37, %v922_v24  ;;  %v705_v39 = vpop.f32.mrb[7].mxu1 }
 0x251   : > { %v706_v40 = vadd.f32 %v922_v24, %v705_v39 }
 0x252   : > { %761 = vst [vmem:[%s1669_s27 + $0x38] sm:$0xff] %v711_v38 }
 0x253   : > { %760 = vst [vmem:[%s1669_s27 + $0x30] sm:$0xff] %v706_v40 }
 0x257   : > { %v1112_v41 = vpop.f32.mrb[8].mxu1 }
 0x258   : > { %v721_v42 = vadd.f32 %v1112_v41, %v922_v24  ;;  %v715_v43 = vpop.f32.mrb[9].mxu1 }
 0x259   : > { %v716_v44 = vadd.f32 %v922_v24, %v715_v43 }
 0x25a   : > { %763 = vst [vmem:[%s1669_s27 + $0x48] sm:$0xff] %v721_v42 }
 0x25b   : > { %762 = vst [vmem:[%s1669_s27 + $0x40] sm:$0xff] %v716_v44 }
 0x25f   : > { %v1115_v45 = vpop.f32.mrb[10].mxu1 }
 0x260   : > { %v731_v46 = vadd.f32 %v1115_v45, %v922_v24  ;;  %v725_v47 = vpop.f32.mrb[11].mxu1 }
 0x261   : > { %v726_v48 = vadd.f32 %v922_v24, %v725_v47 }
 0x262   : > { %765 = vst [vmem:[%s1669_s27 + $0x58] sm:$0xff] %v731_v46 }
 0x263   : > { %764 = vst [vmem:[%s1669_s27 + $0x50] sm:$0xff] %v726_v48 }
 0x267   : > { %v1118_v49 = vpop.f32.mrb[12].mxu1 }
 0x268   : > { %v741_v50 = vadd.f32 %v1118_v49, %v922_v24  ;;  %v735_v51 = vpop.f32.mrb[13].mxu1 }
 0x269   : > { %v736_v52 = vadd.f32 %v922_v24, %v735_v51 }
 0x26a   : > { %767 = vst [vmem:[%s1669_s27 + $0x68] sm:$0xff] %v741_v50 }
 0x26b   : > { %766 = vst [vmem:[%s1669_s27 + $0x60] sm:$0xff] %v736_v52 }
 0x26f   : > { %v1121_v53 = vpop.f32.mrb[14].mxu1 }
 0x270   : > { %v751_v54 = vadd.f32 %v1121_v53, %v922_v24  ;;  %v745_v55 = vpop.f32.mrb[15].mxu1 }
 0x271   : > { %v746_v56 = vadd.f32 %v922_v24, %v745_v55 }
 0x272   : > { %769 = vst [vmem:[%s1669_s27 + $0x78] sm:$0xff] %v751_v54 }
 0x273   : > { %768 = vst [vmem:[%s1669_s27 + $0x70] sm:$0xff] %v746_v56 }
 0x274   : > { %1366 = shalt.err (!%p1363_p2)
}
 0x275   : > { %s1367_s25 = scalar_lea.hbm %s1690_s20, 2048  ;;  %s1371_s10 = scalar_lea.hbm %s1742_s4, 4096 }
 0x276   : > { %p1368_p13 = scmp.ne.s32.totalorder %s1690_s20, %s1367_s25  ;;  %p1372_p4 = scmp.lt.u32.totalorder %s1690_s20, %s1742_s4 }
 0x277   : > { %p1373_p5 = scmp.lt.u32.totalorder %s1371_s10, %s1367_s25  ;;  %p1375_p11 = scmp.lt.u32.totalorder %s1367_s25, %s1690_s20 }
 0x278   : > { %p1369_p6 = pnand %p1368_p13, %p1756_p0 }
 0x279   : > { %p1374_p8 = por %p1373_p5, %p1372_p4 }
 0x27a   : > { %p1370_p10 = pneg %p1369_p6 }
 0x27b   : > { %p1376_p1 = por %p1375_p11, %p1374_p8 }
 0x27d   : > { %p1377_p3 = pnand %p1376_p1, %p1370_p10 }
 0x27f   : > { %1380 = shalt.err (!%p1377_p3)
}
 0x280   : > { %s1433_s27 = smov 128   ;;  %s1434_s30 = smov 8  }
 0x281   : > { %1164 = dma.vmem_to_hbm [thread:$0]  (%p1756_p0), %s1692_s5, 2048, %s1690_s20, %s771_s28, %s1433_s27, %s1433_s27, %s1434_s30  }
 0x282 PF: > { %s799_s6 = sand.u32 1, %s1411_s15   ;;  %p1757_p7 = scmp.ne.s32.totalorder %s1747_s22, 0 }
 0x283   : > { %p1758_p9 = scmp.ge.s32.totalorder %s1423_s18, 2  ;;  %s800_s24 = scalar_lea.sflag [#allocation4], %s799_s6 }
 0x285   : > { %p1178_p12 = pnand %p1758_p9, %p1757_p7 }
 0x287   : > { %1406 = dma.done.wait (!%p1178_p12), %s800_s24, 2048  }
 0x288   : > { %1408 = vsyncadd (!%p1178_p12), %s800_s24, 4294965248  ;;  %p18_p2 = scmp.ge.s32.totalorder %s1570_s9, 4   ;;  %s1759_s15 = smov %s1415_s16 }
 0x289   : > { %s1760_s16 = smov %s1419_s17  ;;  %s1761_s17 = smov %s1586_s14 }
 0x28a   : > { %s1762_s18 = smov %s1570_s9  ;;  %20 = sbr.rel (!%p18_p2) target bundleno = 6 (0x6), region = 89 }
 0x291   :  { %805 = vsyncpa [#allocation3], 1 }
 0x292   :  { %807 = vsyncpa [#allocation3 + $0x1], 1 }
 0x293   :  { %808 = vsyncpa [#allocation6], 1 }
 0x294   :  { %809 = vsyncpa [#allocation4], 1 }
 0x295   :  { %811 = vsyncpa [#allocation4 + $0x1], 1 }

</bundles_post_ra>
